<compile_context>
chip_gen: v5e
topology: v5e:2x2
jax: 0.10.0
libtpu: 0.0.40
codegen_flags: <defaults>
</compile_context>

<pallas_src>
import functools

import jax
import jax.numpy as jnp
from jax.experimental import pallas as pl
from jax.experimental.pallas import tpu as pltpu

_LANES = 128                 # lane axis width: keeps stores unmasked (vst, not vst.msk)
_SMALL_N = 8 * _LANES        # below this, kernel launch + layout glue dwarfs one VPU add


def _add_kernel(x_ref, y_ref, o_ref):
    # Whole-tile elementwise add on the VPU.
    o_ref[...] = x_ref[...] + y_ref[...]


def _sublane_multiple(dtype) -> int:
    # Sublane packing: f32 -> 8, bf16/f16 -> 16, int8/fp8 -> 32.
    itemsize = jnp.dtype(dtype).itemsize
    return 8 * max(1, 4 // itemsize)


@functools.lru_cache(maxsize=None)
def _per_operand_block_bytes() -> int:
    """Per-operand VMEM block budget, sized per TPU generation."""
    try:
        vmem_bytes = pltpu.get_tpu_info().vmem_capacity_bytes
    except Exception:
        vmem_bytes = 64 * 1024 * 1024  # conservative fallback (v7x-sized)
    # 3 operands x 2 pipeline buffers must sit comfortably inside scoped VMEM:
    #   v5e/v6e (128 MiB physical): 4 MiB blocks -> 24 MiB double-buffered.
    #   v7x     ( 64 MiB physical): 2 MiB blocks -> 12 MiB double-buffered.
    return 4 * 1024 * 1024 if vmem_bytes >= 96 * 1024 * 1024 else 2 * 1024 * 1024


def _pick_block_rows(rows: int, dtype) -> int:
    sub = _sublane_multiple(dtype)
    itemsize = jnp.dtype(dtype).itemsize
    target = max(sub, (_per_operand_block_bytes() // (_LANES * itemsize)) // sub * sub)
    rows_rounded = ((rows + sub - 1) // sub) * sub
    return min(target, rows_rounded)


def _pallas_add_2d(x2, y2, block_rows: int):
    rows, lanes = x2.shape
    itemsize = jnp.dtype(x2.dtype).itemsize
    grid = (pl.cdiv(rows, block_rows),)
    return pl.pallas_call(
        _add_kernel,
        out_shape=jax.ShapeDtypeStruct((rows, lanes), x2.dtype),
        grid_spec=pltpu.PrefetchScalarGridSpec(
            num_scalar_prefetch=0,
            grid=grid,
            in_specs=[
                pl.BlockSpec((block_rows, lanes), lambda i: (i, 0)),
                pl.BlockSpec((block_rows, lanes), lambda i: (i, 0)),
            ],
            out_specs=pl.BlockSpec((block_rows, lanes), lambda i: (i, 0)),
        ),
        compiler_params=pltpu.CompilerParams(
            # Row blocks are independent -> shard across TensorCores on v7x.
            dimension_semantics=("parallel",),
            # 3 operands x 2 buffers x <=4 MiB fits; raise v5e's 16 MiB default.
            vmem_limit_bytes=32 * 1024 * 1024,
        ),
        cost_estimate=pl.CostEstimate(
            flops=rows * lanes,
            bytes_accessed=3 * rows * lanes * itemsize,
            transcendentals=0,
        ),
    )(x2, y2)


def pallas_add(x, y):
    """AddModule.forward: z = x + y (broadcasting supported via the wrapper)."""
    x = jnp.asarray(x)
    y = jnp.asarray(y)
    out_shape = jnp.broadcast_shapes(x.shape, y.shape)
    dtype = jnp.result_type(x.dtype, y.dtype)
    x = jnp.broadcast_to(x.astype(dtype), out_shape)
    y = jnp.broadcast_to(y.astype(dtype), out_shape)

    n = x.size
    # Tiny / empty inputs (incl. the module's (1,)-element example): plain JAX
    # is strictly faster than kernel launch + layout glue.
    if n < _SMALL_N:
        return x + y

    xf = x.reshape(-1)
    yf = y.reshape(-1)

    if n % _LANES == 0:
        # Common case: free row-major reshape, no padding, no output copy.
        rows = n // _LANES
        block_rows = _pick_block_rows(rows, dtype)
        out2 = _pallas_add_2d(
            xf.reshape(rows, _LANES), yf.reshape(rows, _LANES), block_rows
        )
        return out2.reshape(out_shape)

    # Ragged case: run the 128-aligned prefix through the kernel; the <128-elem
    # tail is added in plain JAX and stitched back on.
    n_main = (n // _LANES) * _LANES
    rows = n_main // _LANES
    block_rows = _pick_block_rows(rows, dtype)
    out_main = _pallas_add_2d(
        xf[:n_main].reshape(rows, _LANES),
        yf[:n_main].reshape(rows, _LANES),
        block_rows,
    ).reshape(-1)
    tail = xf[n_main:] + yf[n_main:]
    return jnp.concatenate([out_main, tail]).reshape(out_shape)


if __name__ == "__main__":
    key = jax.random.PRNGKey(0)

    # 1) Exact example inputs from the module: torch.ones(1), torch.ones(1).
    x1 = jnp.ones((1,), jnp.float32)
    y1 = jnp.ones((1,), jnp.float32)
    z1 = jax.block_until_ready(pallas_add(x1, y1))
    assert z1.shape == (1,)
    assert jnp.allclose(z1, x1 + y1)

    # 2) Small multi-dim case (single-block kernel path, size % 128 == 0).
    k1, k2, k3, k4, k5, k6 = jax.random.split(key, 6)
    x2 = jax.random.normal(k1, (2, 4, 16, 16), jnp.float32)
    y2 = jax.random.normal(k2, (2, 4, 16, 16), jnp.float32)
    z2 = jax.block_until_ready(pallas_add(x2, y2))
    assert jnp.allclose(z2, x2 + y2, atol=1e-6)

    # 3) Larger case exercising the multi-block pipelined grid.
    x3 = jax.random.normal(k3, (8, 384, 512), jnp.float32)
    y3 = jax.random.normal(k4, (8, 384, 512), jnp.float32)
    z3 = jax.block_until_ready(pallas_add(x3, y3))
    assert jnp.allclose(z3, x3 + y3, atol=1e-6)

    # 4) bf16 (dtype-aware sublane multiple) and ragged-tail paths.
    x4 = jax.random.normal(k5, (4, 96, 256), jnp.bfloat16)
    y4 = jax.random.normal(k6, (4, 96, 256), jnp.bfloat16)
    z4 = jax.block_until_ready(pallas_add(x4, y4))
    assert jnp.allclose(z4.astype(jnp.float32),
                        (x4 + y4).astype(jnp.float32), atol=1e-2)

    x5 = jax.random.normal(k1, (5, 301), jnp.float32)   # 1505 elems: 128-aligned prefix + tail
    y5 = jax.random.normal(k2, (5, 301), jnp.float32)
    z5 = jax.block_until_ready(pallas_add(x5, y5))
    assert jnp.allclose(z5, x5 + y5, atol=1e-6)

    # 5) Zero-size input (previously broken).
    x6 = jnp.zeros((0, 4), jnp.float32)
    y6 = jnp.zeros((0, 4), jnp.float32)
    z6 = jax.block_until_ready(pallas_add(x6, y6))
    assert z6.shape == (0, 4)

    print("KERNEL_OK")
</pallas_src>

<mosaic_0001>
module attributes {stable_mosaic.version = 11 : i64} {
  func.func @_add_kernel(%arg0: i32, %arg1: memref<16x128xf32, #tpu.memory_space<vmem>>, %arg2: memref<16x128xf32, #tpu.memory_space<vmem>>, %arg3: memref<16x128xf32, #tpu.memory_space<vmem>>) attributes {dimension_semantics = [#tpu.dimension_semantics<parallel>], iteration_bounds = array<i64: 1>, scalar_prefetch = 0 : i64, scratch_operands = 0 : i64, tpu.core_type = #tpu.core_type<tc>, window_params = [{transform_indices = @transform_0, window_bounds = array<i64: 16, 128>}, {transform_indices = @transform_1, window_bounds = array<i64: 16, 128>}, {transform_indices = @transform_2, window_bounds = array<i64: 16, 128>}]} {
    %c0 = arith.constant 0 : index
    %c0_0 = arith.constant 0 : index
    %0 = vector.load %arg1[%c0, %c0_0] : memref<16x128xf32, #tpu.memory_space<vmem>>, vector<16x128xf32>
    %c0_1 = arith.constant 0 : index
    %c0_2 = arith.constant 0 : index
    %1 = vector.load %arg2[%c0_1, %c0_2] : memref<16x128xf32, #tpu.memory_space<vmem>>, vector<16x128xf32>
    %2 = arith.addf %0, %1 : vector<16x128xf32>
    %c0_3 = arith.constant 0 : index
    %c0_4 = arith.constant 0 : index
    %3 = vector.load %arg3[%c0_3, %c0_4] : memref<16x128xf32, #tpu.memory_space<vmem>>, vector<16x128xf32>
    tpu.vector_store %arg3[%c0_3, %c0_4], %2 {strides = array<i32>} : memref<16x128xf32, #tpu.memory_space<vmem>>, vector<16x128xf32>,
    return
  }
  func.func @transform_0(%arg0: i32) -> (i32, i32) {
    %c0_i32 = arith.constant 0 : i32
    %c0_i32_0 = arith.constant 0 : i32
    return %arg0, %c0_i32 : i32, i32
  }
  func.func @transform_1(%arg0: i32) -> (i32, i32) {
    %c0_i32 = arith.constant 0 : i32
    %c0_i32_0 = arith.constant 0 : i32
    return %arg0, %c0_i32 : i32, i32
  }
  func.func @transform_2(%arg0: i32) -> (i32, i32) {
    %c0_i32 = arith.constant 0 : i32
    %c0_i32_0 = arith.constant 0 : i32
    return %arg0, %c0_i32 : i32, i32
  }
}

</mosaic_0001>

<bundles_post_ra>
// kernel: tpu_custom_call.1
= control target key start
LH: loop header
LB: loop body
LE: loop exit
PB: predicated region body
PF: predicated region fallthrough
CT: control target
= control target key end

     0   :  { %7 = vsyncpa [#allocation3], 0  ;;  %s184_s0 = inlined_call_operand.hbm [shape: f32[16,128], index: 0, kind: input, shape index: {}]   ;;  %s185_s1 = inlined_call_operand.hbm [shape: f32[16,128], index: 1, kind: input, shape index: {}]   ;;  %s186_s2 = inlined_call_operand.hbm [shape: f32[16,128], index: 2, kind: output, shape index: {}]  }
   0x1   :  { %8 = vsyncpa [#allocation6], 0 }
   0x2   :  { %9 = vsyncpa [#allocation4], 0  ;;  %s14_s11 = sshll.u32 %s184_s0, 4  ;;  %s155_s12 = smov [#allocation2]   ;;  %s15_s11 = int_to_ptr.hbm [resolvable:$true] %s14_s11 }
   0x3   :  { %s16_s13 = sshll.u32 %s155_s12, 4  ;;  %s27_s16 = sshll.u32 %s185_s1, 4  ;;  %s17_s13 = int_to_ptr.vmem [resolvable:$true] %s16_s13  ;;  %s28_s16 = int_to_ptr.hbm [resolvable:$true] %s27_s16 }
   0x4   :  { %s156_s17 = smov 128   ;;  %s157_s18 = smov 8  }
   0x5   :  { %22 = dma.hbm_to_vmem [thread:$0]  %s15_s11, 256, %s17_s13, [#allocation3], %s156_s17, %s156_s17, %s157_s18  }
   0x6   :  { %s158_s19 = smov [#allocation5]  }
   0x7   :  { %s29_s20 = sshll.u32 %s158_s19, 4  ;;  %s30_s20 = int_to_ptr.vmem [resolvable:$true] %s29_s20 }
   0x8   :  { %35 = dma.hbm_to_vmem [thread:$0]  %s28_s16, 256, %s30_s20, [#allocation6], %s156_s17, %s156_s17, %s157_s18  }
   0x9   :  { %149 = dma.done.wait [#allocation3], 256  }
   0xa   :  { %150 = vsyncadd [#allocation3], 4294967040 }
   0xb   :  { %151 = dma.done.wait [#allocation6], 256  }
   0xc   :  { %152 = vsyncadd [#allocation6], 4294967040  ;;  %s159_s0 = smov [#allocation7]   ;;  %s58_s24 = sshll.u32 %s186_s2, 4  ;;  %v44_v0 = vld [vmem:[#allocation2] sm:$0xff]  ;;  %v46_v1 = vld [vmem:[#allocation5] sm:$0xff]  ;;  %s59_s24 = int_to_ptr.hbm [resolvable:$true] %s58_s24 }
   0xd   :  { %s56_s21 = sshll.u32 %s159_s0, 4  ;;  %v45_v2 = vld [vmem:[#allocation2 + $0x8] sm:$0xff]  ;;  %v48_v3 = vadd.f32 %v46_v1, %v44_v0  ;;  %v47_v4 = vld [vmem:[#allocation5 + $0x8] sm:$0xff]  ;;  %s57_s21 = int_to_ptr.vmem [resolvable:$true] %s56_s21 }
   0xe   :  { %v49_v5 = vadd.f32 %v47_v4, %v45_v2 }
   0xf   :  { %50 = vst [vmem:[#allocation7] sm:$0xff] %v48_v3 }
  0x10   :  { %51 = vst [vmem:[#allocation7 + $0x8] sm:$0xff] %v49_v5 }
  0x11   :  { %64 = dma.vmem_to_hbm [thread:$0]  %s57_s21, 256, %s59_s24, [#allocation4], %s156_s17, %s156_s17, %s157_s18  }
  0x12   :  { %153 = dma.done.wait [#allocation4], 256  }
  0x13   :  { %154 = vsyncadd [#allocation4], 4294967040 }
  0x14   :  { %69 = vsyncpa [#allocation3], 1 }
  0x15   :  { %70 = vsyncpa [#allocation6], 1 }
  0x16   :  { %71 = vsyncpa [#allocation4], 1 }

</bundles_post_ra>
